<compile_context>
chip_gen: v6e
topology: v6e:2x2x1
jax: 0.10.0
libtpu: 0.0.40
codegen_flags: <defaults>
</compile_context>

<pallas_src>
import functools

import jax
import jax.numpy as jnp
from jax.experimental import pallas as pl
from jax.experimental.pallas import tpu as pltpu

_LANES = 128
_MAX_TILE_ROWS = 2048  # 2048*128*4B = 1 MiB per input per pipeline buffer


def _bce_kernel(pred_ref, targ_ref, out_ref, acc_ref, *,
                total, num_blocks, block_elems):
    c = pl.program_id(0)          # core split (parallel axis)
    j = pl.program_id(1)          # block within this split (reduction axis)
    bpc = pl.num_programs(1)      # blocks per split
    g = c * bpc + j               # logical global block index

    @pl.when(j == 0)
    def _():
        acc_ref[...] = jnp.zeros_like(acc_ref)

    x = pred_ref[...].astype(jnp.float32)
    t = targ_ref[...].astype(jnp.float32)
    # Numerically-stable BCE-with-logits (matches PyTorch's formulation).
    loss = jnp.maximum(x, 0.0) - x * t + jnp.log1p(jnp.exp(-jnp.abs(x)))

    # Steady-state blocks are fully valid: no masking on the hot path.
    @pl.when(g < num_blocks - 1)
    def _():
        acc_ref[...] += jnp.sum(loss, axis=0, keepdims=True)

    # Last real block and any phantom block: mask padded / OOB tail elements
    # by global element index (loss(0,0) = log 2, so padding must be masked).
    @pl.when(g >= num_blocks - 1)
    def _():
        row = jax.lax.broadcasted_iota(jnp.int32, loss.shape, 0)
        col = jax.lax.broadcasted_iota(jnp.int32, loss.shape, 1)
        idx = g * block_elems + row * _LANES + col
        masked = jnp.where(idx < total, loss, 0.0)
        acc_ref[...] += jnp.sum(masked, axis=0, keepdims=True)

    # Finalize this split's partial sum (single cross-lane reduce).
    @pl.when(j == bpc - 1)
    def _():
        out_ref[0, 0] = jnp.sum(acc_ref[...])


def bce_with_logits_loss(pred, target, reduction="mean",
                         max_tile_rows=_MAX_TILE_ROWS):
    """Pallas implementation of BCEWithLogitsLoss.forward (weight=None path)."""
    assert reduction in (None, "none", "mean", "sum")
    # NOTE: due to the @weighted_loss quirk (inner F.bce already reduces with
    # 'mean'), the reference returns the same scalar mean for every reduction
    # when weight/avg_factor are None, so a single mean kernel covers all cases.
    total = int(pred.size)
    rows = pl.cdiv(total, _LANES)

    # Lane-dense (rows, 128) views. Fast path: pure reshape, no extra HBM pass.
    if total == rows * _LANES:
        p2 = pred.reshape(rows, _LANES)
        t2 = target.reshape(rows, _LANES)
    else:  # ragged tail (< 128 elems): pad the final row; masked in-kernel.
        pad = rows * _LANES - total
        p2 = jnp.pad(pred.reshape(-1), (0, pad)).reshape(rows, _LANES)
        t2 = jnp.pad(target.reshape(-1), (0, pad)).reshape(rows, _LANES)

    if rows <= max_tile_rows:
        tile_rows = rows            # single block == full array dims (legal)
        num_blocks = 1
    else:
        tile_rows = max_tile_rows   # multiple of 8; last block may be partial
        num_blocks = pl.cdiv(rows, tile_rows)

    # Two "parallel" splits so v7x megacore uses both TensorCores; on 1-TC
    # v5e/v6e this just iterates sequentially.
    num_splits = 2 if num_blocks >= 2 else 1
    bpc = pl.cdiv(num_blocks, num_splits)
    block_elems = tile_rows * _LANES

    def block_index(c, j):
        # Clamp phantom blocks (odd num_blocks) onto the last real block; their
        # contribution is fully masked out in-kernel (idx >= total).
        return (jnp.minimum(c * bpc + j, num_blocks - 1), 0)

    kernel = functools.partial(_bce_kernel, total=total,
                               num_blocks=num_blocks, block_elems=block_elems)

    partials = pl.pallas_call(
        kernel,
        out_shape=jax.ShapeDtypeStruct((num_splits, 1), jnp.float32),
        grid_spec=pltpu.PrefetchScalarGridSpec(
            num_scalar_prefetch=0,
            grid=(num_splits, bpc),
            in_specs=[
                pl.BlockSpec((tile_rows, _LANES), block_index),
                pl.BlockSpec((tile_rows, _LANES), block_index),
            ],
            out_specs=pl.BlockSpec((1, 1), lambda c, j: (c, 0),
                                   memory_space=pltpu.SMEM),
            scratch_shapes=[pltpu.VMEM((1, _LANES), jnp.float32)],
        ),
        compiler_params=pltpu.CompilerParams(
            dimension_semantics=("parallel", "arbitrary")),
    )(p2, t2)
    return jnp.sum(partials) * (1.0 / float(total))


class BCEWithLogitsLoss:
    """JAX/Pallas port of the PyTorch module (no learnable parameters)."""

    def __init__(self, reduction="mean", loss_weight=1.0):
        self.reduction = reduction
        self.loss_weight = loss_weight  # not applied in the reference forward

    def __call__(self, pred, target, weight=None, avg_factor=None,
                 reduction_override=None):
        assert reduction_override in (None, "none", "mean", "sum")
        reduction = reduction_override if reduction_override else self.reduction
        # TODO(synk): elementwise `weight` / `avg_factor` paths not exercised
        # (reference default call uses weight=None, avg_factor=None).
        return bce_with_logits_loss(pred, target, reduction=reduction)


def _reference(pred, target):
    x = pred.astype(jnp.float32)
    t = target.astype(jnp.float32)
    return jnp.mean(jnp.maximum(x, 0.0) - x * t + jnp.log1p(jnp.exp(-jnp.abs(x))))


if __name__ == "__main__":
    key = jax.random.PRNGKey(0)
    k1, k2, k3, k4 = jax.random.split(key, 4)

    # 1) NCHW inputs, as the PyTorch module would see from a conv head.
    pred = jax.random.normal(k1, (2, 4, 16, 16), dtype=jnp.float32)
    target = (jax.random.uniform(k2, (2, 4, 16, 16)) > 0.5).astype(jnp.float32)
    loss_mod = BCEWithLogitsLoss(reduction="mean", loss_weight=1.0)
    loss = jax.block_until_ready(loss_mod(pred, target))
    ref = _reference(pred, target)
    assert jnp.allclose(loss, ref, rtol=1e-5, atol=1e-6), (loss, ref)

    # 2) Ragged size + multi-block + phantom-block path (tiny tiles force it).
    pred2 = jax.random.normal(k3, (4, 625), dtype=jnp.float32)
    target2 = (jax.random.uniform(k4, (4, 625)) > 0.5).astype(jnp.float32)
    loss2 = jax.block_until_ready(
        bce_with_logits_loss(pred2, target2, max_tile_rows=8))
    ref2 = _reference(pred2, target2)
    assert jnp.allclose(loss2, ref2, rtol=1e-5, atol=1e-6), (loss2, ref2)

    # 3) Even multi-block split on the lane-aligned fast path.
    loss3 = jax.block_until_ready(
        bce_with_logits_loss(pred, target, max_tile_rows=8))
    assert jnp.allclose(loss3, ref, rtol=1e-5, atol=1e-6), (loss3, ref)

    print("KERNEL_OK")
</pallas_src>

<mosaic_0001>
module attributes {stable_mosaic.version = 11 : i64} {
  func.func @_bce_kernel(%arg0: i32, %arg1: i32, %arg2: memref<16x128xf32, #tpu.memory_space<vmem>>, %arg3: memref<16x128xf32, #tpu.memory_space<vmem>>, %arg4: memref<1x1xf32, #tpu.memory_space<smem>>, %arg5: memref<1x128xf32, #tpu.memory_space<vmem>>) attributes {dimension_semantics = [#tpu.dimension_semantics<parallel>, #tpu.dimension_semantics<arbitrary>], iteration_bounds = array<i64: 1, 1>, scalar_prefetch = 0 : i64, scratch_operands = 1 : i64, tpu.core_type = #tpu.core_type<tc>, window_params = [{transform_indices = @transform_0, window_bounds = array<i64: 16, 128>}, {transform_indices = @transform_1, window_bounds = array<i64: 16, 128>}, {transform_indices = @transform_2, window_bounds = array<i64: 1, 1>}]} {
    %c1_i32 = arith.constant 1 : i32
    %0 = arith.muli %arg0, %c1_i32 : i32
    %1 = arith.addi %0, %arg1 : i32
    %c0_i32 = arith.constant 0 : i32
    %2 = arith.cmpi eq, %arg1, %c0_i32 : i32
    %3 = arith.extui %2 : i1 to i32
    %c0_i32_0 = arith.constant 0 : i32
    %4 = arith.cmpi ne, %3, %c0_i32_0 : i32
    scf.if %4 {
      %cst_11 = arith.constant 0.000000e+00 : f32
      %26 = vector.broadcast %cst_11 : f32 to vector<1x128xf32>
      %c0_12 = arith.constant 0 : index
      %c0_13 = arith.constant 0 : index
      %27 = vector.load %arg5[%c0_12, %c0_13] : memref<1x128xf32, #tpu.memory_space<vmem>>, vector<1x128xf32>
      tpu.vector_store %arg5[%c0_12, %c0_13], %26 {strides = array<i32>} : memref<1x128xf32, #tpu.memory_space<vmem>>, vector<1x128xf32>,
    } else {
    }
    %c0 = arith.constant 0 : index
    %c0_1 = arith.constant 0 : index
    %5 = vector.load %arg2[%c0, %c0_1] : memref<16x128xf32, #tpu.memory_space<vmem>>, vector<16x128xf32>
    %c0_2 = arith.constant 0 : index
    %c0_3 = arith.constant 0 : index
    %6 = vector.load %arg3[%c0_2, %c0_3] : memref<16x128xf32, #tpu.memory_space<vmem>>, vector<16x128xf32>
    %cst = arith.constant 0.000000e+00 : f32
    %7 = vector.broadcast %cst : f32 to vector<16x128xf32>
    %8 = arith.maximumf %5, %7 : vector<16x128xf32>
    %9 = arith.mulf %5, %6 : vector<16x128xf32>
    %10 = arith.subf %8, %9 : vector<16x128xf32>
    %11 = math.absf %5 : vector<16x128xf32>
    %cst_4 = arith.constant 0.000000e+00 : f32
    %12 = vector.broadcast %cst_4 : f32 to vector<16x128xf32>
    %13 = arith.subf %12, %11 : vector<16x128xf32>
    %14 = math.exp %13 : vector<16x128xf32>
    %15 = math.log1p %14 : vector<16x128xf32>
    %16 = arith.addf %10, %15 : vector<16x128xf32>
    %c0_i32_5 = arith.constant 0 : i32
    %17 = arith.cmpi slt, %1, %c0_i32_5 : i32
    %18 = arith.extui %17 : i1 to i32
    %c0_i32_6 = arith.constant 0 : i32
    %19 = arith.cmpi ne, %18, %c0_i32_6 : i32
    scf.if %19 {
      %c0_11 = arith.constant 0 : index
      %c0_12 = arith.constant 0 : index
      %26 = vector.load %arg5[%c0_11, %c0_12] : memref<1x128xf32, #tpu.memory_space<vmem>>, vector<1x128xf32>
      %cst_13 = arith.constant dense<0.000000e+00> : vector<128xf32>
      %27 = vector.multi_reduction <add>, %16, %cst_13 [0] : vector<16x128xf32> to vector<128xf32>
      %28 = vector.shape_cast %27 : vector<128xf32> to vector<1x128xf32>
      %29 = arith.addf %26, %28 : vector<1x128xf32>
      %c0_14 = arith.constant 0 : index
      %c0_15 = arith.constant 0 : index
      %30 = vector.load %arg5[%c0_14, %c0_15] : memref<1x128xf32, #tpu.memory_space<vmem>>, vector<1x128xf32>
      tpu.vector_store %arg5[%c0_14, %c0_15], %29 {strides = array<i32>} : memref<1x128xf32, #tpu.memory_space<vmem>>, vector<1x128xf32>,
    } else {
    }
    %c0_i32_7 = arith.constant 0 : i32
    %20 = arith.cmpi sge, %1, %c0_i32_7 : i32
    %21 = arith.extui %20 : i1 to i32
    %c0_i32_8 = arith.constant 0 : i32
    %22 = arith.cmpi ne, %21, %c0_i32_8 : i32
    scf.if %22 {
      %26 = tpu.iota {dimensions = array<i32: 0>} : vector<16x128xi32>
      %27 = tpu.iota {dimensions = array<i32: 1>} : vector<16x128xi32>
      %c2048_i32 = arith.constant 2048 : i32
      %28 = arith.muli %1, %c2048_i32 : i32
      %c128_i32 = arith.constant 128 : i32
      %29 = vector.broadcast %c128_i32 : i32 to vector<16x128xi32>
      %30 = arith.muli %26, %29 : vector<16x128xi32>
      %31 = vector.broadcast %28 : i32 to vector<16x128xi32>
      %32 = arith.addi %31, %30 : vector<16x128xi32>
      %33 = arith.addi %32, %27 : vector<16x128xi32>
      %c2048_i32_11 = arith.constant 2048 : i32
      %34 = vector.broadcast %c2048_i32_11 : i32 to vector<16x128xi32>
      %35 = arith.cmpi slt, %33, %34 : vector<16x128xi32>
      %cst_12 = arith.constant 0.000000e+00 : f32
      %36 = vector.broadcast %cst_12 : f32 to vector<16x128xf32>
      %37 = arith.select %35, %16, %36 : vector<16x128xi1>, vector<16x128xf32>
      %c0_13 = arith.constant 0 : index
      %c0_14 = arith.constant 0 : index
      %38 = vector.load %arg5[%c0_13, %c0_14] : memref<1x128xf32, #tpu.memory_space<vmem>>, vector<1x128xf32>
      %cst_15 = arith.constant dense<0.000000e+00> : vector<128xf32>
      %39 = vector.multi_reduction <add>, %37, %cst_15 [0] : vector<16x128xf32> to vector<128xf32>
      %40 = vector.shape_cast %39 : vector<128xf32> to vector<1x128xf32>
      %41 = arith.addf %38, %40 : vector<1x128xf32>
      %c0_16 = arith.constant 0 : index
      %c0_17 = arith.constant 0 : index
      %42 = vector.load %arg5[%c0_16, %c0_17] : memref<1x128xf32, #tpu.memory_space<vmem>>, vector<1x128xf32>
      tpu.vector_store %arg5[%c0_16, %c0_17], %41 {strides = array<i32>} : memref<1x128xf32, #tpu.memory_space<vmem>>, vector<1x128xf32>,
    } else {
    }
    %c0_i32_9 = arith.constant 0 : i32
    %23 = arith.cmpi eq, %arg1, %c0_i32_9 : i32
    %24 = arith.extui %23 : i1 to i32
    %c0_i32_10 = arith.constant 0 : i32
    %25 = arith.cmpi ne, %24, %c0_i32_10 : i32
    scf.if %25 {
      %c0_11 = arith.constant 0 : index
      %c0_12 = arith.constant 0 : index
      %26 = vector.load %arg5[%c0_11, %c0_12] : memref<1x128xf32, #tpu.memory_space<vmem>>, vector<1x128xf32>
      %27 = vector.shape_cast %26 : vector<1x128xf32> to vector<1x1x128xf32>
      %cst_13 = arith.constant dense<0.000000e+00> : vector<1xf32>
      %28 = vector.multi_reduction <add>, %27, %cst_13 [1, 2] : vector<1x1x128xf32> to vector<1xf32>
      %29 = vector.shape_cast %28 : vector<1xf32> to vector<1x1x1xf32>
      %30 = vector.extract %29[0, 0, 0] : f32 from vector<1x1x1xf32>
      %c0_14 = arith.constant 0 : index
      %c0_15 = arith.constant 0 : index
      %31 = memref.load %arg4[%c0_14, %c0_15] : memref<1x1xf32, #tpu.memory_space<smem>>
      memref.store %30, %arg4[%c0_14, %c0_15] : memref<1x1xf32, #tpu.memory_space<smem>>
    } else {
    }
    return
  }
  func.func @transform_0(%arg0: i32, %arg1: i32) -> (i32, i32) {
    %c1_i32 = arith.constant 1 : i32
    %0 = arith.muli %arg0, %c1_i32 : i32
    %1 = arith.addi %0, %arg1 : i32
    %c0_i32 = arith.constant 0 : i32
    %2 = arith.minsi %1, %c0_i32 : i32
    %c0_i32_0 = arith.constant 0 : i32
    %c0_i32_1 = arith.constant 0 : i32
    return %2, %c0_i32_0 : i32, i32
  }
  func.func @transform_1(%arg0: i32, %arg1: i32) -> (i32, i32) {
    %c1_i32 = arith.constant 1 : i32
    %0 = arith.muli %arg0, %c1_i32 : i32
    %1 = arith.addi %0, %arg1 : i32
    %c0_i32 = arith.constant 0 : i32
    %2 = arith.minsi %1, %c0_i32 : i32
    %c0_i32_0 = arith.constant 0 : i32
    %c0_i32_1 = arith.constant 0 : i32
    return %2, %c0_i32_0 : i32, i32
  }
  func.func @transform_2(%arg0: i32, %arg1: i32) -> (i32, i32) {
    %c0_i32 = arith.constant 0 : i32
    %c0_i32_0 = arith.constant 0 : i32
    return %arg0, %c0_i32 : i32, i32
  }
}

</mosaic_0001>

<bundles_post_ra>
// kernel: tpu_custom_call.1
= control target key start
LH: loop header
LB: loop body
LE: loop exit
PB: predicated region body
PF: predicated region fallthrough
CT: control target
= control target key end

     0   :  { %7 = vsyncpa [#allocation4], 0  ;;  %s285_s0 = inlined_call_operand.hbm [shape: f32[16,128], index: 0, kind: input, shape index: {}]   ;;  %s286_s1 = inlined_call_operand.hbm [shape: f32[16,128], index: 1, kind: input, shape index: {}]   ;;  %s287_s2 = inlined_call_operand.hbm [shape: f32[1,1], index: 2, kind: output, shape index: {}]  }
   0x1   :  { %8 = vsyncpa [#allocation7], 0 }
   0x2   :  { %9 = vsyncpa [#allocation5], 0  ;;  %s255_s9 = smov [#allocation3]  }
   0x3   :  { %s21_s10 = sshll.u32 %s255_s9, 4  ;;  %s22_s10 = int_to_ptr.vmem [resolvable:$true] %s21_s10 }
   0x4   :  { %s209_s11 = scalar_lea.vmem %s22_s10, 256  ;;  %p214_p1 = scmp.lt.s32.totalorder %s22_s10, %s22_s10 }
   0x5   :  { %p210_p0 = scmp.ne.s32.totalorder %s22_s10, %s209_s11  ;;  %p215_p2 = scmp.lt.s32.totalorder %s209_s11, %s209_s11 }
   0x7   :  { %p216_p3 = por %p215_p2, %p214_p1 }
   0x9   :  { %p217_p4 = pnand %p216_p3, %p210_p0 }
   0xb   :  { %220 = shalt.err (!%p217_p4)
}
   0xc   :  { %s256_s12 = smov 128   ;;  %s257_s13 = smov 8  }
   0xd   :  { %27 = dma.hbm_to_vmem [thread:$0]  %s285_s0, 256, %s22_s10, [#allocation4], %s256_s12, %s256_s12, %s257_s13  }
   0xe   :  { %s258_s16 = smov [#allocation6]  }
   0xf   :  { %s39_s17 = sshll.u32 %s258_s16, 4  ;;  %s40_s17 = int_to_ptr.vmem [resolvable:$true] %s39_s17 }
  0x10   :  { %s229_s18 = scalar_lea.vmem %s40_s17, 256  ;;  %p234_p6 = scmp.lt.s32.totalorder %s40_s17, %s40_s17 }
  0x11   :  { %p230_p5 = scmp.ne.s32.totalorder %s40_s17, %s229_s18  ;;  %p235_p7 = scmp.lt.s32.totalorder %s229_s18, %s229_s18 }
  0x13   :  { %p236_p8 = por %p235_p7, %p234_p6 }
  0x15   :  { %p237_p9 = pnand %p236_p8, %p230_p5 }
  0x17   :  { %240 = shalt.err (!%p237_p9)
}
  0x18   :  { %45 = dma.hbm_to_vmem [thread:$0]  %s286_s1, 256, %s40_s17, [#allocation7], %s256_s12, %s256_s12, %s257_s13  }
  0x19   :  { %249 = dma.done.wait [#allocation4], 256  }
  0x1a   :  { %250 = vsyncadd [#allocation4], 4294967040 }
  0x1b   :  { %251 = dma.done.wait [#allocation7], 256  }
  0x1c   :  { %252 = vsyncadd [#allocation7], 4294967040  ;;  %v259_v0 = vmov 0.0   ;;  %v66_v1 = vld [vmem:[#allocation3] sm:$0xff]  ;;  %v67_v2 = vld [vmem:[#allocation3 + $0x8] sm:$0xff]  ;;  %v122_v9 = vlaneseq  ;;  %vm153_vm4 = vcmask 1040384  }
  0x1d   :  { %65 = vst [vmem:[#allocation2] sm:$0x1] %v259_v0  ;;  %v76_v3 = vand.u32 2147483647, %v66_v1  ;;  %v77_v4 = vand.u32 2147483647, %v67_v2 }
  0x1e   :  { %v123_v14 = vshrl.u32 %v122_v9, 7  ;;  %v68_v18 = vld [vmem:[#allocation6] sm:$0xff]  ;;  %v69_v19 = vld [vmem:[#allocation6 + $0x8] sm:$0xff]  ;;  %v126_v21 = vand.u32 127, %v122_v9  ;;  %v70_v24 = vmax.f32 %v66_v1, 0.0  ;;  %v71_v28 = vmax.f32 %v67_v2, 0.0 }
  0x1f   :  { %v78_v5 = vsub.f32 0.0, %v76_v3  ;;  %v79_v6 = vsub.f32 0.0, %v77_v4  ;;  %v72_v25 = vmul.f32 %v68_v18, %v66_v1  ;;  %v73_v29 = vmul.f32 %v69_v19, %v67_v2  ;;  %s260_s1 = smov [#allocation8]  }
  0x20   :  { %v124_v16 = vadd.s32 8, %v123_v14  ;;  %v128_v22 = vmul.u32 128, %v123_v14 }
  0x21   :  { %v80_v7 = vmul.f32 1.442695, %v78_v5  ;;  %v82_v8 = vmul.f32 1.442695, %v79_v6  ;;  %v74_v34 = vsub.f32 %v70_v24, %v72_v25  ;;  %v75_v38 = vsub.f32 %v71_v28, %v73_v29 }
  0x22   :  { %v129_v23 = vmul.u32 128, %v124_v16  ;;  %v133_v32 = vadd.s32 %v128_v22, %v126_v21 }
  0x23   :  { %193 = vpow2.f32 %v80_v7 }
  0x24   :  { %195 = vpow2.f32 %v82_v8  ;;  %v134_v36 = vadd.s32 %v129_v23, %v126_v21  ;;  %vm135_vm2 = vcmp.lt.s32.totalorder %v133_v32, 2048  ;;  %v139_v53 = vld [vmem:[#allocation2] sm:$0x1] }
  0x26   :  { %vm136_vm3 = vcmp.lt.s32.totalorder %v134_v36, 2048 }
  0x30   :  { %v194_v10 = vpop.eup %193 }
  0x31   :  { %v196_v11 = vpop.eup %195  ;;  %v84_v12 = vadd.f32 1.0, %v194_v10  ;;  %v87_v15 = vmul.f32 -0.5, %v194_v10  ;;  %v90_v26 = vand.u32 2147483647, %v194_v10 }
  0x32   :  { %v93_v13 = vadd.f32 1.0, %v196_v11  ;;  %v96_v17 = vmul.f32 -0.5, %v196_v11  ;;  %v99_v30 = vand.u32 2147483647, %v196_v11 }
  0x33   :  { %197 = vlog2.f32 %v84_v12  ;;  %v88_v20 = vadd.f32 1.0, %v87_v15  ;;  %vm91_vm0 = vcmp.lt.f32.partialorder %v90_v26, 0.0004427343 }
  0x34   :  { %199 = vlog2.f32 %v93_v13  ;;  %v97_v27 = vadd.f32 1.0, %v96_v17  ;;  %vm100_vm1 = vcmp.lt.f32.partialorder %v99_v30, 0.0004427343 }
  0x35   :  { %v89_v31 = vmul.f32 %v194_v10, %v88_v20 }
  0x36   :  { %v98_v35 = vmul.f32 %v196_v11, %v97_v27 }
  0x40   :  { %v198_v33 = vpop.eup %197 }
  0x41   :  { %v200_v37 = vpop.eup %199  ;;  %v86_v39 = vmul.f32 0.6931472, %v198_v33 }
  0x42   :  { %v95_v40 = vmul.f32 0.6931472, %v200_v37 }
  0x43   :  { %v92_v41 = vsel %vm91_vm0, %v89_v31, %v86_v39 }
  0x44   :  { %v101_v42 = vsel %vm100_vm1, %v98_v35, %v95_v40  ;;  %v102_v43 = vadd.f32 %v92_v41, %v74_v34 }
  0x45   :  { %v103_v44 = vadd.f32 %v101_v42, %v75_v38 }
  0x46   :  { %v137_v45 = vsel %vm135_vm2, %v102_v43, 0.0 }
  0x47   :  { %v138_v46 = vsel %vm136_vm3, %v103_v44, 0.0 }
  0x48   :  { %v140_v47 = vadd.f32 %v138_v46, %v137_v45 }
  0x4a   :  { %v141_v48 = vrot.slane %v140_v47, 4 }
  0x4c   :  { %v142_v49 = vadd.f32 %v141_v48, %v140_v47 }
  0x4e   :  { %v143_v50 = vrot.slane %v142_v49, 2 }
  0x50   :  { %v144_v51 = vadd.f32 %v143_v50, %v142_v49 }
  0x52   :  { %v145_v52 = vrot.slane %v144_v51, 1 }
  0x54   :  { %v146_v54 = vadd.f32 %v145_v52, %v144_v51 }
  0x56   :  { %v147_v55 = vadd.f32 %v146_v54, %v139_v53 }
  0x58   :  { %148 = vst [vmem:[#allocation2] sm:$0x1] %v147_v55 }
  0x5f   :  { %v152_v56 = vld [vmem:[#allocation2] sm:$0x1] }
  0x60   :  { %v154_v57 = vsel %vm153_vm4, %v152_v56, 0.0 }
  0x61   :  { %155 = vadd.xlane.f32.xlu0 %v154_v57 }
  0xea   :  { %v156_v58 = vpop.xlane.xlu0 %155 }
  0xeb   :  { %v157_v59 = vrot.slane %v156_v58, 4 }
  0xed   :  { %v158_v60 = vadd.f32 %v157_v59, %v156_v58 }
  0xef   :  { %v159_v61 = vrot.slane %v158_v60, 2 }
  0xf1   :  { %v160_v62 = vadd.f32 %v159_v61, %v158_v60 }
  0xf3   :  { %v161_v63 = vrot.slane %v160_v62, 1 }
  0xf5   :  { %v162_v0 = vadd.f32 %v161_v63, %v160_v62 }
  0xf7   :  { %185 = vpush %v162_v0 }
 0x128   :  { %s186_s0 = spop %185 }
 0x129   :  { %165 = sst [smem:[#allocation8]] %s186_s0 }
 0x12a   :  { %173 = dma.smem_to_hbm %s260_s1, 16, %s287_s2, [#allocation5]  }
 0x12b   :  { %253 = dma.done.wait [#allocation5], 16  }
 0x12c   :  { %254 = vsyncadd [#allocation5], 4294967280 }
 0x12d   :  { %177 = sfence }
 0x12e   :  { %178 = vsyncpa [#allocation4], 1 }
 0x12f   :  { %179 = vsyncpa [#allocation7], 1 }
 0x130   :  { %180 = vsyncpa [#allocation5], 1 }

</bundles_post_ra>
